<compile_context>
chip_gen: v5e
topology: v5e:2x2
jax: 0.10.0
libtpu: 0.0.40
codegen_flags: <defaults>
</compile_context>

<pallas_src>
import math

import jax
import jax.numpy as jnp
from jax.experimental import pallas as pl
from jax.experimental.pallas import tpu as pltpu


def _round_up(v, m):
    return ((v + m - 1) // m) * m


def _gcn_kernel(x_ref, w_ref, a_ref, b_ref, o_ref, acc_ref):
    # x_ref: (1, TK, Fi) bf16   w_ref: (Fi, Fo) bf16   a_ref: (TM, TK) bf16
    # b_ref: (1, Fo) f32        o_ref: (1, TM, Fo) f32 acc_ref: (TM, Fo) f32
    k = pl.program_id(2)

    @pl.when(k == 0)
    def _():
        acc_ref[...] = jnp.zeros_like(acc_ref)

    # Feature transform for this column tile of nodes (cheap; recomputed per
    # reduction step instead of materializing the full (N, F_out) slab).
    h = jnp.dot(x_ref[0], w_ref[...], preferred_element_type=jnp.float32)   # (TK, Fo)
    # Aggregation: accumulate A[i, k] @ h_k into the f32 scratch accumulator.
    acc_ref[...] += jnp.dot(
        a_ref[...], h.astype(jnp.bfloat16), preferred_element_type=jnp.float32
    )

    @pl.when(k == pl.num_programs(2) - 1)
    def _():
        o_ref[0] = (acc_ref[...] + b_ref[...]).astype(o_ref.dtype)


def graph_conv_pallas(x, adj_norm, weight, bias, *, tm=512, tk=1024):
    """x: (B, N, F_in) f32, adj_norm: (N, N) f32, weight: (F_in, F_out), bias: (F_out,)."""
    B, N, F_in = x.shape
    F_out = weight.shape[1]

    # Lane-dense feature dims; node dims padded so the adjacency tiles evenly.
    f_in_p = _round_up(F_in, 128)
    f_out_p = _round_up(F_out, 128)
    tm = min(tm, _round_up(N, 8))       # sublane-aligned row tile of A
    tk = min(tk, _round_up(N, 128))     # lane-aligned reduction tile of A
    n_m = _round_up(N, tm)              # padded output-node dim
    n_k = _round_up(N, tk)              # padded reduction-node dim

    # bf16 MXU inputs; zero padding keeps the math exact for the real region.
    x_p = jnp.zeros((B, n_k, f_in_p), jnp.bfloat16).at[:, :N, :F_in].set(
        x.astype(jnp.bfloat16))
    w_p = jnp.zeros((f_in_p, f_out_p), jnp.bfloat16).at[:F_in, :F_out].set(
        weight.astype(jnp.bfloat16))
    a_p = jnp.zeros((n_m, n_k), jnp.bfloat16).at[:N, :N].set(
        adj_norm.astype(jnp.bfloat16))
    b_p = jnp.zeros((1, f_out_p), jnp.float32).at[0, :F_out].set(
        bias.astype(jnp.float32))

    grid = (B, n_m // tm, n_k // tk)

    out = pl.pallas_call(
        _gcn_kernel,
        out_shape=jax.ShapeDtypeStruct((B, n_m, f_out_p), jnp.float32),
        grid_spec=pltpu.PrefetchScalarGridSpec(
            num_scalar_prefetch=0,
            grid=grid,
            in_specs=[
                pl.BlockSpec((1, tk, f_in_p), lambda b, i, k: (b, k, 0)),
                pl.BlockSpec((f_in_p, f_out_p), lambda b, i, k: (0, 0)),
                pl.BlockSpec((tm, tk), lambda b, i, k: (i, k)),
                pl.BlockSpec((1, f_out_p), lambda b, i, k: (0, 0)),
            ],
            out_specs=pl.BlockSpec((1, tm, f_out_p), lambda b, i, k: (b, i, 0)),
            scratch_shapes=[pltpu.VMEM((tm, f_out_p), jnp.float32)],
        ),
        compiler_params=pltpu.CompilerParams(
            dimension_semantics=("parallel", "parallel", "arbitrary"),
            vmem_limit_bytes=48 * 1024 * 1024,   # headroom below v7x's 64 MiB VMEM
        ),
    )(x_p, w_p, a_p, b_p)

    return out[:, :N, :F_out].astype(x.dtype)


def build_normalized_adjacency(edge_index, edge_weight, num_nodes):
    """Plain-JAX glue: add_self_loops + symmetric normalization + densify."""
    loop = jnp.arange(num_nodes, dtype=edge_index.dtype)
    edge_index = jnp.concatenate([edge_index, jnp.stack([loop, loop])], axis=1)
    loop_w = jnp.ones((num_nodes,), dtype=edge_weight.dtype)  # fill_value = 1
    edge_weight = jnp.concatenate([edge_weight, loop_w], axis=0)

    row, col = edge_index[0], edge_index[1]
    deg = jax.ops.segment_sum(edge_weight, row, num_segments=num_nodes)
    deg_inv_sqrt = deg ** -0.5
    deg_inv_sqrt = jnp.where(jnp.isinf(deg_inv_sqrt), 0.0, deg_inv_sqrt)
    lap = deg_inv_sqrt[row] * edge_weight * deg_inv_sqrt[col]

    adj = jnp.zeros((num_nodes, num_nodes), dtype=edge_weight.dtype)
    adj = adj.at[row, col].add(lap)
    return adj


def init_graph_conv_params(key, in_features, out_features):
    # kaiming_normal_(a=0, mode='fan_in') on an (in, out) tensor:
    # PyTorch's fan_in for a 2-D tensor is size(1) == out_features.
    fan_in = out_features
    std = math.sqrt(2.0) / math.sqrt(fan_in)
    w = jax.random.normal(key, (in_features, out_features), jnp.float32) * std
    b = jnp.zeros((out_features,), jnp.float32)  # constant_(0.0)
    return w, b


if __name__ == "__main__":
    B, N, F_in, F_out = 2, 16, 8, 16

    key = jax.random.PRNGKey(0)
    kx, kw, ke = jax.random.split(key, 3)

    x = jax.random.normal(kx, (B, N, F_in), jnp.float32)

    # Deterministic bidirectional ring graph.
    src = jnp.arange(N, dtype=jnp.int32)
    dst = (src + 1) % N
    edge_index = jnp.concatenate(
        [jnp.stack([src, dst]), jnp.stack([dst, src])], axis=1
    )  # (2, 2N)
    edge_weight = jax.random.uniform(
        ke, (edge_index.shape[1],), jnp.float32, minval=0.5, maxval=1.5
    )

    weight, bias = init_graph_conv_params(kw, F_in, F_out)
    adj_norm = build_normalized_adjacency(edge_index, edge_weight, N)

    out = graph_conv_pallas(x, adj_norm, weight, bias)
    out = jax.block_until_ready(out)

    # Pure-JAX reference of the same math at matching (bf16-input) precision.
    x_bf = x.astype(jnp.bfloat16).astype(jnp.float32)
    w_bf = weight.astype(jnp.bfloat16).astype(jnp.float32)
    a_bf = adj_norm.astype(jnp.bfloat16).astype(jnp.float32)
    h_ref = jnp.einsum("bni,io->bno", x_bf, w_bf)
    h_ref = h_ref.astype(jnp.bfloat16).astype(jnp.float32)  # matches in-kernel cast
    ref = jnp.einsum("nm,bmf->bnf", a_bf, h_ref) + bias

    assert out.shape == (B, N, F_out)
    assert jnp.allclose(out, ref, atol=1e-2, rtol=1e-2), float(
        jnp.max(jnp.abs(out - ref))
    )

    print("KERNEL_OK")
</pallas_src>

<mosaic_0001>
module attributes {stable_mosaic.version = 11 : i64} {
  func.func @_gcn_kernel(%arg0: i32, %arg1: i32, %arg2: i32, %arg3: memref<1x128x128xbf16, #tpu.memory_space<vmem>>, %arg4: memref<128x128xbf16, #tpu.memory_space<vmem>>, %arg5: memref<16x128xbf16, #tpu.memory_space<vmem>>, %arg6: memref<1x128xf32, #tpu.memory_space<vmem>>, %arg7: memref<1x16x128xf32, #tpu.memory_space<vmem>>, %arg8: memref<16x128xf32, #tpu.memory_space<vmem>>) attributes {dimension_semantics = [#tpu.dimension_semantics<parallel>, #tpu.dimension_semantics<parallel>, #tpu.dimension_semantics<arbitrary>], iteration_bounds = array<i64: 2, 1, 1>, scalar_prefetch = 0 : i64, scratch_operands = 1 : i64, tpu.core_type = #tpu.core_type<tc>, window_params = [{transform_indices = @transform_0, window_bounds = array<i64: 1, 128, 128>}, {pipeline_mode = #tpu.pipeline_mode<synchronous>, transform_indices = @transform_1, window_bounds = array<i64: 128, 128>}, {transform_indices = @transform_2, window_bounds = array<i64: 16, 128>}, {pipeline_mode = #tpu.pipeline_mode<synchronous>, transform_indices = @transform_3, window_bounds = array<i64: 1, 128>}, {transform_indices = @transform_4, window_bounds = array<i64: 1, 16, 128>}]} {
    %c0_i32 = arith.constant 0 : i32
    %0 = arith.cmpi eq, %arg2, %c0_i32 : i32
    %1 = arith.extui %0 : i1 to i32
    %c0_i32_0 = arith.constant 0 : i32
    %2 = arith.cmpi ne, %1, %c0_i32_0 : i32
    scf.if %2 {
      %cst_14 = arith.constant 0.000000e+00 : f32
      %16 = vector.broadcast %cst_14 : f32 to vector<16x128xf32>
      %c0_15 = arith.constant 0 : index
      %c0_16 = arith.constant 0 : index
      %17 = vector.load %arg8[%c0_15, %c0_16] : memref<16x128xf32, #tpu.memory_space<vmem>>, vector<16x128xf32>
      tpu.vector_store %arg8[%c0_15, %c0_16], %16 {strides = array<i32>} : memref<16x128xf32, #tpu.memory_space<vmem>>, vector<16x128xf32>,
    } else {
    }
    %c0 = arith.constant 0 : index
    %c0_1 = arith.constant 0 : index
    %c0_2 = arith.constant 0 : index
    %3 = vector.load %arg3[%c0, %c0_1, %c0_2] : memref<1x128x128xbf16, #tpu.memory_space<vmem>>, vector<1x128x128xbf16>
    %4 = vector.shape_cast %3 : vector<1x128x128xbf16> to vector<128x128xbf16>
    %c0_3 = arith.constant 0 : index
    %c0_4 = arith.constant 0 : index
    %5 = vector.load %arg4[%c0_3, %c0_4] : memref<128x128xbf16, #tpu.memory_space<vmem>>, vector<128x128xbf16>
    %cst = arith.constant dense<0.000000e+00> : vector<128x128xf32>
    %6 = tpu.matmul %4, %5, %cst {dimension_numbers = #tpu.dot_dimension_numbers<[1], [0], [0], [1], [0, 0, 1, 1], [], []>} : vector<128x128xbf16>, vector<128x128xbf16>, vector<128x128xf32> -> vector<128x128xf32>
    %c0_5 = arith.constant 0 : index
    %c0_6 = arith.constant 0 : index
    %7 = vector.load %arg8[%c0_5, %c0_6] : memref<16x128xf32, #tpu.memory_space<vmem>>, vector<16x128xf32>
    %c0_7 = arith.constant 0 : index
    %c0_8 = arith.constant 0 : index
    %8 = vector.load %arg5[%c0_7, %c0_8] : memref<16x128xbf16, #tpu.memory_space<vmem>>, vector<16x128xbf16>
    %9 = arith.truncf %6 : vector<128x128xf32> to vector<128x128xbf16>
    %cst_9 = arith.constant dense<0.000000e+00> : vector<16x128xf32>
    %10 = tpu.matmul %8, %9, %cst_9 {dimension_numbers = #tpu.dot_dimension_numbers<[1], [0], [0], [1], [0, 0, 1, 1], [], []>} : vector<16x128xbf16>, vector<128x128xbf16>, vector<16x128xf32> -> vector<16x128xf32>
    %11 = arith.addf %7, %10 : vector<16x128xf32>
    %c0_10 = arith.constant 0 : index
    %c0_11 = arith.constant 0 : index
    %12 = vector.load %arg8[%c0_10, %c0_11] : memref<16x128xf32, #tpu.memory_space<vmem>>, vector<16x128xf32>
    tpu.vector_store %arg8[%c0_10, %c0_11], %11 {strides = array<i32>} : memref<16x128xf32, #tpu.memory_space<vmem>>, vector<16x128xf32>,
    %c0_i32_12 = arith.constant 0 : i32
    %13 = arith.cmpi eq, %arg2, %c0_i32_12 : i32
    %14 = arith.extui %13 : i1 to i32
    %c0_i32_13 = arith.constant 0 : i32
    %15 = arith.cmpi ne, %14, %c0_i32_13 : i32
    scf.if %15 {
      %c0_14 = arith.constant 0 : index
      %c0_15 = arith.constant 0 : index
      %16 = vector.load %arg8[%c0_14, %c0_15] : memref<16x128xf32, #tpu.memory_space<vmem>>, vector<16x128xf32>
      %c0_16 = arith.constant 0 : index
      %c0_17 = arith.constant 0 : index
      %17 = vector.load %arg6[%c0_16, %c0_17] : memref<1x128xf32, #tpu.memory_space<vmem>>, vector<1x128xf32>
      %18 = vector.broadcast %17 : vector<1x128xf32> to vector<16x128xf32>
      %19 = arith.addf %16, %18 : vector<16x128xf32>
      %c0_18 = arith.constant 0 : index
      %c0_19 = arith.constant 0 : index
      %c0_20 = arith.constant 0 : index
      %20 = vector.load %arg7[%c0_18, %c0_19, %c0_20] : memref<1x16x128xf32, #tpu.memory_space<vmem>>, vector<1x16x128xf32>
      %21 = vector.shape_cast %20 : vector<1x16x128xf32> to vector<16x128xf32>
      %22 = vector.shape_cast %19 : vector<16x128xf32> to vector<1x16x128xf32>
      tpu.vector_store %arg7[%c0_18, %c0_19, %c0_20], %22 {strides = array<i32>} : memref<1x16x128xf32, #tpu.memory_space<vmem>>, vector<1x16x128xf32>,
    } else {
    }
    return
  }
  func.func @transform_0(%arg0: i32, %arg1: i32, %arg2: i32) -> (i32, i32, i32) {
    %c0_i32 = arith.constant 0 : i32
    %c0_i32_0 = arith.constant 0 : i32
    return %arg0, %arg2, %c0_i32 : i32, i32, i32
  }
  func.func @transform_1(%arg0: i32, %arg1: i32, %arg2: i32) -> (i32, i32) {
    %c0_i32 = arith.constant 0 : i32
    %c0_i32_0 = arith.constant 0 : i32
    %c0_i32_1 = arith.constant 0 : i32
    return %c0_i32, %c0_i32_0 : i32, i32
  }
  func.func @transform_2(%arg0: i32, %arg1: i32, %arg2: i32) -> (i32, i32) {
    %c0_i32 = arith.constant 0 : i32
    return %arg1, %arg2 : i32, i32
  }
  func.func @transform_3(%arg0: i32, %arg1: i32, %arg2: i32) -> (i32, i32) {
    %c0_i32 = arith.constant 0 : i32
    %c0_i32_0 = arith.constant 0 : i32
    %c0_i32_1 = arith.constant 0 : i32
    return %c0_i32, %c0_i32_0 : i32, i32
  }
  func.func @transform_4(%arg0: i32, %arg1: i32, %arg2: i32) -> (i32, i32, i32) {
    %c0_i32 = arith.constant 0 : i32
    %c0_i32_0 = arith.constant 0 : i32
    return %arg0, %arg1, %c0_i32 : i32, i32, i32
  }
}

</mosaic_0001>

<bundles_post_ra>
// kernel: tpu_custom_call.1
= control target key start
LH: loop header
LB: loop body
LE: loop exit
PB: predicated region body
PF: predicated region fallthrough
CT: control target
= control target key end

     0   :  { %s1241_s0 = inlined_call_operand.hbm [shape: bf16[2,128,128], index: 0, kind: input, shape index: {}]   ;;  %s1242_s1 = inlined_call_operand.hbm [shape: bf16[128,128], index: 1, kind: input, shape index: {}]   ;;  %s1243_s2 = inlined_call_operand.hbm [shape: bf16[16,128], index: 2, kind: input, shape index: {}]   ;;  %s1244_s3 = inlined_call_operand.vmem [shape: f32[1,128], index: 3, kind: input, shape index: {}]   ;;  %s1245_s4 = inlined_call_operand.hbm [shape: f32[2,16,128], index: 4, kind: output, shape index: {}]  }
   0x1   :  { %1247 = sst [smem:[#allocation13_spill]] %s1242_s1 }
   0x2   :  { %9 = vsyncpa [#allocation4], 0 }
   0x3   :  { %11 = vsyncpa [#allocation4 + $0x1], 0 }
   0x4   :  { %12 = vsyncpa [#allocation7], 0 }
   0x5   :  { %13 = vsyncpa [#allocation5], 0 }
   0x6   :  { %15 = vsyncpa [#allocation5 + $0x1], 0  ;;  %s1072_s15 = smov 0   ;;  %s1074_s16 = smov 0  }
   0x7   :  { %s1076_s17 = smov 0   ;;  %s1078_s18 = smov 0  }
   0x8   :  { %s1080_s19 = smov 0   ;;  %s1082_s20 = smov 0  }
   0x9 LB: > { %s653_s21 = sadd.s32 4294967295, %s1039_s20   ;;  %s654_s22 = sadd.s32 4294967294, %s1039_s20   ;;  %s1039_s20 = sphi %s1082_s20, %s21_s20   ;;  %s1035_s19 = sphi %s1080_s19, %s1259_s19   ;;  %s1031_s18 = sphi %s1078_s18, %s1258_s18   ;;  %s1027_s17 = sphi %s1076_s17, %s1257_s17   ;;  %s1023_s16 = sphi %s1074_s16, %s1256_s16   ;;  %s1019_s15 = sphi %s1072_s15, %s1255_s15  }
   0xa   : > { %p62_p0 = scmp.ne.s32.totalorder %s1023_s16, %s1019_s15  ;;  %p1108_p1 = scmp.eq.s32.totalorder %s653_s21, 0 }
   0xb   : > { %p164_p2 = scmp.eq.s32.totalorder %s654_s22, 1  ;;  %p655_p4 = scmp.ge.s32.totalorder %s1039_s20, 1 }
   0xc   : > { %p1114_p3 = por %p1108_p1, %p62_p0  ;;  %p171_p6 = scmp.lt.s32.totalorder %s1039_s20, 3 }
   0xd   : > { %p1119_p5 = por %p164_p2, %p62_p0  ;;  %s1251_s1 = sld [smem:[#allocation13_spill]] }
   0xe   : > { %p1127_p7 = pnand %p655_p4, %p171_p6  ;;  %s1041_s30 = smov [#allocation6]  }
   0xf   : > { %s184_s5 = sshll.u32 %s1041_s30, 4  ;;  %p658_p10 = scmp.ge.s32.totalorder %s1039_s20, 2  ;;  %s185_s5 = int_to_ptr.vmem [resolvable:$true] %s184_s5 }
  0x10   : > { %p787_p8 = pneg %p1127_p7  ;;  %s200_s8 = sshll.u32 %s1243_s2, 4  ;;  %s201_s8 = int_to_ptr.hbm [resolvable:$true] %s200_s8 }
  0x11   : > { %s1246_s9 = smov 64   ;;  %s1043_s10 = smov 4  }
  0x12   : > { %p788_p9 = pnand %p787_p8, %p1108_p1  ;;  %s1044_s11 = smov [#allocation8]  }
  0x13   : > { %s182_s28 = sshll.u32 %s1251_s1, 4  ;;  %s202_s12 = sshll.u32 %s1044_s11, 4  ;;  %s183_s28 = int_to_ptr.hbm [resolvable:$true] %s182_s28  ;;  %s203_s12 = int_to_ptr.vmem [resolvable:$true] %s202_s12 }
  0x14   : > { %790 = dma.hbm_to_vmem [thread:$0]  (!%p788_p9), %s183_s28, 1024, %s185_s5, [#allocation7], %s1246_s9, %s1246_s9, %s1043_s10  }
  0x15   : > { %793 = dma.hbm_to_vmem [thread:$0]  (!%p788_p9), %s201_s8, 128, %s203_s12, [#allocation7], %s1246_s9, %s1246_s9, %s1043_s10  }
  0x16   : > { %p158_p11 = scmp.eq.s32.totalorder %s653_s21, 1  ;;  %s40_s13 = sadd.s32 1, %s1035_s19 }
  0x17   : > { %p42_p12 = scmp.ge.s32.totalorder %s40_s13, 2  ;;  %s49_s14 = sadd.s32 1, %s1027_s17 }
  0x18   : > { %p56_p13 = scmp.ne.s32.totalorder %s1027_s17, %s1023_s16  ;;  %p57_p0 = scmp.eq.s32.totalorder %s1039_s20, 0 }
  0x19   : > { %s1261_s13 = smov (%p42_p12, %s40_s13), 0  ;;  %p804_p4 = scmp.lt.s32.totalorder %s1039_s20, 2 }
  0x1a   : > { %p1154_p2 = por %p158_p11, %p56_p13  ;;  %s44_s26 = ssub.s32 %s1035_s19, %s1261_s13 }
  0x1b   : > { %s219_s27 = sand.u32 1, %s1027_s17   ;;  %p47_p6 = scmp.eq.s32.totalorder %s44_s26, 0 }
  0x1c   : > { %p58_p8 = por %p57_p0, %p56_p13  ;;  %s659_s28 = sshll.u32 %s219_s27, 6 }
  0x1d   : > { %s740_s21 = sshll.u32 %s1035_s19, 6  ;;  %s223_s11 = scalar_lea.vmem [#allocation3], %s659_s28 }
  0x1e   : > { %s1164_s30 = scalar_select %p47_p6, %s1027_s17, %s49_s14  }
  0x1f   : > { %s230_s7 = scalar_lea.hbm %s1241_s0, %s740_s21  ;;  %s233_s12 = sshll.u32 %s223_s11, 4  ;;  %s234_s12 = int_to_ptr.vmem [resolvable:$true] %s233_s12 }
  0x20   : > { %s231_s8 = sshll.u32 %s230_s7, 4  ;;  %p795_p9 = pnand %p804_p4, %p58_p8  ;;  %s232_s8 = int_to_ptr.hbm [resolvable:$true] %s231_s8 }
  0x21   : > { %s220_s9 = scalar_lea.sflag [#allocation4], %s219_s27  ;;  %s1254_s1 = smov 64  }
  0x22   : > { %797 = dma.hbm_to_vmem [thread:$0]  (!%p795_p9), %s232_s8, 1024, %s234_s12, %s220_s9, %s1254_s1, %s1254_s1, %s1043_s10  }
  0x23   : > { %245 = sbr.rel (%p1127_p7) target bundleno = 420 (0x1a4), region = 36  ;;  %s1177_s14 = sand.u32 (!%p1127_p7), 1, %s1023_s16  }
  0x24   : > { %s663_s26 = sshll.u32 (!%p1127_p7), %s1177_s14, 6  ;;  %s248_s28 = scalar_lea.sflag (!%p1127_p7), [#allocation4], %s1177_s14 }
  0x25   : > { %s1181_s21 = scalar_lea.vmem (!%p1127_p7), [#allocation3], %s663_s26 }
  0x28   : > { %1006 = dma.done.wait (%p1114_p3), %s248_s28, 1024  }
  0x29   : > { %1008 = vsyncadd (%p1114_p3), %s248_s28, 4294966272 }
  0x2a   : > { %1010 = dma.done.wait (%p1108_p1), [#allocation7], 1152  }
  0x2b   : > { %1012 = vsyncadd (%p1108_p1), [#allocation7], 4294966144  ;;  %v756_v0 = vld [vmem:[#allocation6 + $0x38] sm:$0xff]  ;;  %v755_v1 = vld [vmem:[#allocation6 + $0x30] sm:$0xff]  ;;  %s666_s1 = sshll.u32 %s1177_s14, 4  ;;  %s758_s29 = sshll.u32 %s1031_s18, 4 }
  0x2c   : > { %760 = vmatpush.bf16.msra.mxu3 %v756_v0  ;;  %759 = vmatpush.bf16.msra.mxu2 %v756_v0  ;;  %v754_v2 = vld [vmem:[#allocation6 + $0x28] sm:$0xff]  ;;  %v753_v3 = vld [vmem:[#allocation6 + $0x20] sm:$0xff]  ;;  %v752_v4 = vld [vmem:[#allocation6 + $0x18] sm:$0xff]  ;;  %s536_s27 = scalar_lea.hbm %s1245_s4, %s758_s29  ;;  %s286_s5 = scalar_lea.vmem [#allocation9], %s666_s1 }
  0x2d   : > { %424 = vmatpush.bf16.msra.mxu0 %v756_v0  ;;  %v751_v5 = vld [vmem:[#allocation6 + $0x10] sm:$0xff]  ;;  %v750_v6 = vld [vmem:[#allocation6 + $0x8] sm:$0xff]  ;;  %v749_v7 = vld [vmem:[#allocation6] sm:$0xff]  ;;  %s537_s6 = sshll.u32 %s286_s5, 4  ;;  %s539_s7 = sshll.u32 %s536_s27, 4  ;;  %s538_s6 = int_to_ptr.vmem [resolvable:$true] %s537_s6  ;;  %s540_s7 = int_to_ptr.hbm [resolvable:$true] %s539_s7 }
  0x2e   : > { %v746_v8 = vld [vmem:[%s1181_s21 + $0x28] sm:$0xff]  ;;  %v743_v9 = vld [vmem:[%s1181_s21 + $0x10] sm:$0xff]  ;;  %v741_v10 = vld [vmem:[%s1181_s21] sm:$0xff]  ;;  %s523_s8 = scalar_lea.sflag [#allocation5], %s1177_s14  ;;  %s967_s11 = sshra.s32 %s540_s7, 4  ;;  %s968_s11 = int_to_ptr.hbm [resolvable:$true] %s967_s11 }
  0x2f   : > { %v747_v11 = vld [vmem:[%s1181_s21 + $0x30] sm:$0xff]  ;;  %v744_v12 = vld [vmem:[%s1181_s21 + $0x18] sm:$0xff]  ;;  %v742_v13 = vld [vmem:[%s1181_s21 + $0x8] sm:$0xff]  ;;  %s969_s18 = scalar_lea.hbm %s968_s11, 16  ;;  %s973_s28 = scalar_lea.hbm %s1245_s4, 32 }
  0x30   : > { %762 = vmatpush.bf16.msra.mxu3 %v755_v1  ;;  %761 = vmatpush.bf16.msra.mxu2 %v755_v1  ;;  %v748_v14 = vld [vmem:[%s1181_s21 + $0x38] sm:$0xff]  ;;  %v745_v15 = vld [vmem:[%s1181_s21 + $0x20] sm:$0xff]  ;;  %p970_p1 = scmp.ne.s32.totalorder %s968_s11, %s969_s18  ;;  %p974_p11 = scmp.lt.s32.totalorder %s968_s11, %s1245_s4 }
  0x31   : > { %425 = vmatpush.bf16.msra.mxu0 %v755_v1  ;;  %v757_v40 = vld [vmem:[#allocation8] sm:$0xff]  ;;  %p975_p12 = scmp.lt.s32.totalorder %s973_s28, %s969_s18 }
  0x32   : > { %v862_v41 = vld [vmem:[%s1244_s3] ss:$0 sm:$0xff]  ;;  %p971_p3 = pnand %p970_p1, %p1154_p2 }
  0x33   : > { %p976_p13 = por %p975_p12, %p974_p11 }
  0x34   : > { %764 = vmatpush.bf16.msra.mxu3 %v754_v2  ;;  %763 = vmatpush.bf16.msra.mxu2 %v754_v2  ;;  %p972_p7 = pneg %p971_p3 }
  0x35   : > { %426 = vmatpush.bf16.msra.mxu0 %v754_v2 }
  0x36   : > { %p977_p0 = pnand %p976_p13, %p972_p7 }
  0x38   : > { %766 = vmatpush.bf16.msra.mxu3 %v753_v3  ;;  %765 = vmatpush.bf16.msra.mxu2 %v753_v3 }
  0x39   : > { %427 = vmatpush.bf16.msra.mxu0 %v753_v3 }
  0x3c   : > { %768 = vmatpush.bf16.msra.mxu3 %v752_v4  ;;  %767 = vmatpush.bf16.msra.mxu2 %v752_v4 }
  0x3d   : > { %428 = vmatpush.bf16.msra.mxu0 %v752_v4 }
  0x40   : > { %770 = vmatpush.bf16.msra.mxu3 %v751_v5  ;;  %769 = vmatpush.bf16.msra.mxu2 %v751_v5 }
  0x41   : > { %429 = vmatpush.bf16.msra.mxu0 %v751_v5 }
  0x44   : > { %772 = vmatpush.bf16.msra.mxu3 %v750_v6  ;;  %771 = vmatpush.bf16.msra.mxu2 %v750_v6 }
  0x45   : > { %430 = vmatpush.bf16.msra.mxu0 %v750_v6 }
  0x48   : > { %774 = vmatpush.bf16.msra.mxu3 %v749_v7  ;;  %773 = vmatpush.bf16.msra.mxu2 %v749_v7 }
  0x49   : > { %431 = vmatpush.bf16.msra.mxu0 %v749_v7 }
  0x4b   : > { %457 = vmatmul.bf16.vlgmr.msra.gmra.mxu3 %v746_v8  ;;  %442 = vmatmul.bf16.vlgmr.msra.gmra.mxu2 %v743_v9 }
  0x4c   : > { %432 = vmatmul.bf16.vlgmr.msra.gmra.mxu0 %v741_v10 }
  0x5b   : > { %462 = vmatmul.bf16.gmra.mxu3 %v747_v11  ;;  %447 = vmatmul.bf16.gmra.mxu2 %v744_v12 }
  0x5c   : > { %437 = vmatmul.bf16.gmra.mxu0 %v742_v13 }
  0x6b   : > { %467 = vmatmul.bf16.gmra.mxu3 %v748_v14  ;;  %452 = vmatmul.bf16.gmra.mxu2 %v745_v15 }
  0xc9   : > { %v433_v24 = vpop.f32.mrf.mxu0 }
  0xce   : > { %v458_v16 = vpop.f32.mrf.mxu3  ;;  %v443_v17 = vpop.f32.mrf.mxu2 }
  0xd1   : > { %v435_v29 = vpop.f32.mrf.mxu0 }
  0xd2   : > { %v477_v39 = vpack.c.bf16 %v435_v29, %v433_v24 }
  0xd6   : > { %v460_v18 = vpop.f32.mrf.mxu3  ;;  %v445_v19 = vpop.f32.mrf.mxu2 }
  0xd7   : > { %v482_v31 = vpack.c.bf16 %v460_v18, %v458_v16  ;;  %v479_v36 = vpack.c.bf16 %v445_v19, %v443_v17 }
  0xd9   : > { %v438_v33 = vpop.f32.mrf.mxu0 }
  0xde   : > { %v463_v20 = vpop.f32.mrf.mxu3  ;;  %v448_v21 = vpop.f32.mrf.mxu2 }
  0xe1   : > { %v440_v37 = vpop.f32.mrf.mxu0 }
  0xe2   : > { %v478_v38 = vpack.c.bf16 %v440_v37, %v438_v33 }
  0xe6   : > { %v465_v22 = vpop.f32.mrf.mxu3  ;;  %v450_v23 = vpop.f32.mrf.mxu2 }
  0xe7   : > { %v483_v30 = vpack.c.bf16 %v465_v22, %v463_v20  ;;  %v480_v35 = vpack.c.bf16 %v450_v23, %v448_v21 }
  0xee   : > { %v468_v25 = vpop.f32.mrf.mxu3  ;;  %v453_v26 = vpop.f32.mrf.mxu2 }
  0xf6   : > { %v470_v27 = vpop.f32.mrf.mxu3  ;;  %v455_v32 = vpop.f32.mrf.mxu2 }
  0xf7   : > { %v484_v28 = vpack.c.bf16 %v470_v27, %v468_v25  ;;  %v481_v34 = vpack.c.bf16 %v455_v32, %v453_v26 }
  0xf9   : > { %491 = vmatpush.bf16.msra.mxu1 %v484_v28 }
  0xfd   : > { %492 = vmatpush.bf16.msra.mxu1 %v483_v30 }
 0x101   : > { %493 = vmatpush.bf16.msra.mxu1 %v482_v31 }
 0x105   : > { %494 = vmatpush.bf16.msra.mxu1 %v481_v34 }
 0x109   : > { %495 = vmatpush.bf16.msra.mxu1 %v480_v35 }
 0x10d   : > { %496 = vmatpush.bf16.msra.mxu1 %v479_v36 }
 0x111   : > { %497 = vmatpush.bf16.msra.mxu1 %v478_v38 }
 0x115   : > { %498 = vmatpush.bf16.msra.mxu1 %v477_v39 }
 0x118   : > { %499 = vmatmul.bf16.vlgmr.msra.gmra.mxu1 %v757_v40 }
 0x195   : > { %v500_v42 = vpop.f32.mrf.mxu1 }
 0x196   : > { %v518_v43 = vadd.f32 %v862_v41, %v500_v42 }
 0x198   : > { %520 = vst [vmem:[%s286_s5] sm:$0xff] %v518_v43 }
 0x19d   : > { %v502_v44 = vpop.f32.mrf.mxu1 }
 0x19e   : > { %v519_v45 = vadd.f32 %v862_v41, %v502_v44 }
 0x1a0   : > { %521 = vst [vmem:[%s286_s5 + $0x8] sm:$0xff] %v519_v45 }
 0x1a1   : > { %980 = shalt.err (!%p977_p0)
}
 0x1a2   : > { %s1045_s14 = smov 128   ;;  %s1046_s23 = smov 8  }
 0x1a3   : > { %785 = dma.vmem_to_hbm [thread:$0]  (%p1154_p2), %s538_s6, 256, %s540_s7, %s523_s8, %s1045_s14, %s1045_s14, %s1046_s23  }
 0x1a4 PF: > { %s554_s24 = sand.u32 1, %s1019_s15   ;;  %p799_p4 = pnand %p658_p10, %p1119_p5 }
 0x1a5   : > { %s555_s29 = scalar_lea.sflag [#allocation5], %s554_s24 }
 0x1a6   : > { %p800_p6 = pneg %p799_p4 }
 0x1a8   : > { %1014 = dma.done.wait (%p800_p6), %s555_s29, 256  }
 0x1a9   : > { %1016 = vsyncadd (%p800_p6), %s555_s29, 4294967040  ;;  %s21_s20 = sadd.s32 1, %s1039_s20   ;;  %s1255_s15 = smov %s1023_s16 }
 0x1aa   : > { %p18_p8 = scmp.ge.s32.totalorder %s21_s20, 4   ;;  %s1256_s16 = smov %s1027_s17 }
 0x1ab   : > { %s1257_s17 = smov %s1164_s30  ;;  %s1258_s18 = smov %s1035_s19 }
 0x1ac   : > { %s1259_s19 = smov %s1261_s13  ;;  %20 = sbr.rel (!%p18_p8) target bundleno = 9 (0x9), region = 98 }
 0x1b1   :  { %561 = vsyncpa [#allocation4], 1 }
 0x1b2   :  { %563 = vsyncpa [#allocation4 + $0x1], 1 }
 0x1b3   :  { %564 = vsyncpa [#allocation7], 1 }
 0x1b4   :  { %565 = vsyncpa [#allocation5], 1 }
 0x1b5   :  { %567 = vsyncpa [#allocation5 + $0x1], 1 }

</bundles_post_ra>
